<compile_context>
chip_gen: v5e
topology: v5e:2x2
jax: 0.10.0
libtpu: 0.0.40
codegen_flags: <defaults>
</compile_context>

<pallas_src>
import functools

import jax
import jax.numpy as jnp
import numpy as np
from jax.experimental import pallas as pl
from jax.experimental.pallas import tpu as pltpu


# --------------------------------------------------------------------------- #
# Kernel
# --------------------------------------------------------------------------- #
def _resblock_kernel(*refs, K, H, W, Cin, Cout, Nb, learnable):
    """Fused ResidualBlock for a block of Nb images (grid iterates over batch groups).

    refs (learnable shortcut):
      x_ref    : (Nb, H, W*Cin)       bf16  row-flattened NHWC input block
      bsc_ref  : (W*Cin, W*Cout)      bf16  1x1 shortcut as block-diagonal matrix
      b1_ref   : (K, W*Cin, W*Cout)   bf16  conv1 banded weights (one per row tap dy)
      b2_ref   : (K, W*Cout, W*Cout)  bf16  conv2 banded weights
      bias_ref : (3, W*Cout)          f32   [shortcut, conv1, conv2] biases tiled over W
      o_ref    : (Nb, H, W*Cout)      bf16  output (lane-dense)
      xpad_ref : (Nb, H+2P, W*Cin)    bf16  scratch: ReLU(x) with zero row halo
      hpad_ref : (Nb, H+2P, W*Cout)   bf16  scratch: ReLU(h) with zero row halo
      acc_ref  : (Nb*H, W*Cout)       f32   scratch: shortcut + conv2 accumulator
    """
    P = (K - 1) // 2
    if learnable:
        (x_ref, bsc_ref, b1_ref, b2_ref, bias_ref, o_ref,
         xpad_ref, hpad_ref, acc_ref) = refs
    else:
        (x_ref, b1_ref, b2_ref, bias_ref, o_ref,
         xpad_ref, hpad_ref, acc_ref) = refs

    M = Nb * H                                      # matmul M-dim (Nb*H rows)
    x = x_ref[...].reshape(M, W * Cin)              # compute dtype (bf16)

    # ---- shortcut -> f32 accumulator held in VMEM scratch ------------------
    if learnable:
        acc_ref[...] = (jnp.dot(x, bsc_ref[...], preferred_element_type=jnp.float32)
                        + bias_ref[0:1, :])
        relu_x = jnp.maximum(x, 0)
    else:
        xf = x.astype(jnp.float32)
        acc_ref[...] = xf                                        # identity (Cin == Cout)
        relu_x = jnp.maximum(xf, 0.0).astype(xpad_ref.dtype)     # f32 max (v5e-friendly)

    # ---- conv1(ReLU(x)): zero H halo rows, write ReLU(x) into the interior -
    # Halo re-zeroed every step: zero-once-at-pid==0 is unsafe with megacore
    # "parallel" grids (per-core scratch); the cost is 2*P tiny row stores.
    if P > 0:
        zx = jnp.zeros((Nb, P, W * Cin), xpad_ref.dtype)
        xpad_ref[:, 0:P, :] = zx
        xpad_ref[:, P + H:P + H + P, :] = zx
    xpad_ref[:, P:P + H, :] = relu_x.reshape(Nb, H, W * Cin)

    h = None
    for dy in range(K):                             # K MXU matmuls, f32 acc
        src = relu_x if dy == P else xpad_ref[:, dy:dy + H, :].reshape(M, W * Cin)
        t = jnp.dot(src, b1_ref[dy], preferred_element_type=jnp.float32)
        h = t if h is None else h + t               # first tap initializes h
    h = h + bias_ref[1:2, :]
    relu_h = jnp.maximum(h, 0.0).astype(hpad_ref.dtype)

    # ---- conv2(ReLU(h)) -> accumulate onto the shortcut --------------------
    if P > 0:
        zh = jnp.zeros((Nb, P, W * Cout), hpad_ref.dtype)
        hpad_ref[:, 0:P, :] = zh
        hpad_ref[:, P + H:P + H + P, :] = zh
    hpad_ref[:, P:P + H, :] = relu_h.reshape(Nb, H, W * Cout)

    for dy in range(K):
        src = relu_h if dy == P else hpad_ref[:, dy:dy + H, :].reshape(M, W * Cout)
        acc_ref[...] += jnp.dot(src, b2_ref[dy], preferred_element_type=jnp.float32)

    out = acc_ref[...] + bias_ref[2:3, :]
    o_ref[...] = out.reshape(Nb, H, W * Cout).astype(o_ref.dtype)


# --------------------------------------------------------------------------- #
# Weight preparation (built ONCE per parameter set, reused across forwards)
# --------------------------------------------------------------------------- #
def _banded_conv_weights(w_hwio, W):
    """Fold a KxK 'same'-padded conv (odd K, stride 1) into K block-banded matrices
    B of shape (K, W*Cin, W*Cout) such that, with row-flattened (channels-fastest)
    image rows and a zero row halo:  out_row[h] = sum_dy padded_in_row[h+dy] @ B[dy].
    Zero padding along W is folded into the bands (out-of-range taps dropped)."""
    K, _, Cin, Cout = w_hwio.shape
    P = (K - 1) // 2
    v = jnp.arange(W)[:, None, None]          # input column index
    w = jnp.arange(W)[None, :, None]          # output column index
    d = jnp.arange(K)[None, None, :]          # tap index dx
    sel = (v == w + d - P).astype(w_hwio.dtype)              # (W, W, K)
    B = jnp.einsum('vwd,ydio->yviwo', sel, w_hwio)            # (K, W, Cin, W, Cout)
    return B.reshape(K, W * Cin, W * Cout)


def _block_diag_1x1(w_sc, W):
    """1x1 conv as a (W*Cin, W*Cout) block-diagonal matrix (row-flattened layout)."""
    Cin, Cout = w_sc.shape
    eye = jnp.eye(W, dtype=w_sc.dtype)
    B = jnp.einsum('vw,io->viwo', eye, w_sc)                  # (W, Cin, W, Cout)
    return B.reshape(W * Cin, W * Cout)


def prepare_residual_block_params(params, W, *, compute_dtype=jnp.bfloat16):
    """Precompute banded/block-diagonal weights and tiled biases once."""
    w1, b1 = params["w1"], params["b1"]
    w2, b2 = params["w2"], params["b2"]
    learnable = "w_sc" in params
    Cout = w1.shape[-1]
    b_sc = params["b_sc"] if learnable else jnp.zeros((Cout,), jnp.float32)
    prep = {
        "B1": _banded_conv_weights(w1, W).astype(compute_dtype),
        "B2": _banded_conv_weights(w2, W).astype(compute_dtype),
        "bias_all": jnp.stack([jnp.tile(b_sc, W), jnp.tile(b1, W),
                               jnp.tile(b2, W)]).astype(jnp.float32),
    }
    if learnable:
        prep["Bsc"] = _block_diag_1x1(params["w_sc"][0, 0], W).astype(compute_dtype)
    return prep


# --------------------------------------------------------------------------- #
# Core pallas_call on the row-flattened layout
# --------------------------------------------------------------------------- #
def _pick_batch_block(N, H, target_rows=256, min_rows=128):
    """Largest divisor Nb of N with Nb*H <= target MXU rows; prefer >=2 grid steps
    (pipelining / megacore) when that still keeps Nb*H >= min_rows."""
    divisors = [d for d in range(1, N + 1) if N % d == 0]
    fit = [d for d in divisors if d * H <= target_rows] or [1]
    nb = max(fit)
    if N // nb < 2:
        alt = [d for d in fit if N // d >= 2 and d * H >= min_rows]
        if alt:
            nb = max(alt)
    return nb


def _residual_block_rowflat(x_rows, prepared, *, W):
    """x_rows: (N, H, W*Cin) compute-dtype, row-flattened NHWC (channels fastest).
    Returns (N, H, W*Cout) in the compute dtype."""
    N, H, WCin = x_rows.shape
    Cin = WCin // W
    compute_dtype = x_rows.dtype
    B1, B2, bias_all = prepared["B1"], prepared["B2"], prepared["bias_all"]
    learnable = "Bsc" in prepared
    K = B1.shape[0]
    Cout = B2.shape[1] // W
    P = (K - 1) // 2
    assert K % 2 == 1, "even kernel_size needs asymmetric padding (unsupported)"
    assert B1.shape[1] == W * Cin and B1.shape[2] == W * Cout
    if not learnable:
        assert Cin == Cout, "identity shortcut requires in_channels == out_channels"

    Nb = _pick_batch_block(N, H)
    grid = (N // Nb,)

    const = functools.partial(pl.BlockSpec, pipeline_mode=pl.Buffered(1))
    inputs = [x_rows]
    in_specs = [pl.BlockSpec((Nb, H, W * Cin), lambda n: (n, 0, 0))]
    if learnable:
        inputs.append(prepared["Bsc"])
        in_specs.append(const((W * Cin, W * Cout), lambda n: (0, 0)))
    inputs += [B1, B2, bias_all]
    in_specs += [
        const((K, W * Cin, W * Cout), lambda n: (0, 0, 0)),
        const((K, W * Cout, W * Cout), lambda n: (0, 0, 0)),
        const((3, W * Cout), lambda n: (0, 0)),
    ]

    kernel = functools.partial(
        _resblock_kernel, K=K, H=H, W=W, Cin=Cin, Cout=Cout, Nb=Nb,
        learnable=learnable)

    # Advisory cost estimate (counts the banded-matmul zeros; advisory only).
    flops = 2 * N * H * (W * Cin) * (W * Cout) * (1 if learnable else 0)
    flops += 2 * N * K * H * (W * Cin) * (W * Cout)           # conv1
    flops += 2 * N * K * H * (W * Cout) * (W * Cout)          # conv2
    itemsize = jnp.dtype(compute_dtype).itemsize
    bytes_accessed = int(sum(int(a.size) * a.dtype.itemsize for a in inputs)
                         + N * H * W * Cout * itemsize)

    # Explicit VMEM budget: weights single-buffered, I/O double-buffered, + scratch.
    vmem_need = (
        2 * Nb * H * W * Cin * itemsize
        + 2 * Nb * H * W * Cout * itemsize
        + sum(int(a.size) * a.dtype.itemsize for a in inputs[1:])
        + Nb * (H + 2 * P) * W * Cin * itemsize
        + Nb * (H + 2 * P) * W * Cout * itemsize
        + Nb * H * W * Cout * 4)
    vmem_limit = int(min(48 * 1024 * 1024, max(2 * vmem_need, 16 * 1024 * 1024)))

    return pl.pallas_call(
        kernel,
        out_shape=jax.ShapeDtypeStruct((N, H, W * Cout), compute_dtype),
        grid_spec=pltpu.PrefetchScalarGridSpec(
            num_scalar_prefetch=0,
            grid=grid,
            in_specs=in_specs,
            out_specs=pl.BlockSpec((Nb, H, W * Cout), lambda n: (n, 0, 0)),
            scratch_shapes=[
                pltpu.VMEM((Nb, H + 2 * P, W * Cin), compute_dtype),
                pltpu.VMEM((Nb, H + 2 * P, W * Cout), compute_dtype),
                pltpu.VMEM((Nb * H, W * Cout), jnp.float32),
            ],
        ),
        compiler_params=pltpu.CompilerParams(
            dimension_semantics=("parallel",),
            vmem_limit_bytes=vmem_limit),
        cost_estimate=pl.CostEstimate(
            flops=int(flops), transcendentals=0, bytes_accessed=bytes_accessed),
    )(*inputs)


# --------------------------------------------------------------------------- #
# Public forwards
# --------------------------------------------------------------------------- #
def residual_block_forward(x_nchw, prepared, *, compute_dtype=jnp.bfloat16):
    """NCHW in / NCHW out (PyTorch layout).  Output dtype is `compute_dtype`
    (bf16) to halve HBM writeback; cast outside if f32 is required."""
    N, Cin, H, W = x_nchw.shape
    # Cast first so the layout transpose moves half the bytes.
    x = jnp.transpose(x_nchw.astype(compute_dtype), (0, 2, 3, 1)).reshape(N, H, W * Cin)
    out = _residual_block_rowflat(x, prepared, W=W)
    Cout = out.shape[-1] // W
    return jnp.transpose(out.reshape(N, H, W, Cout), (0, 3, 1, 2))


def residual_block_forward_nhwc(x_nhwc, prepared, *, compute_dtype=jnp.bfloat16):
    """NHWC in / NHWC out — preferred entry point (no layout transposes at all)."""
    N, H, W, Cin = x_nhwc.shape
    x = x_nhwc.astype(compute_dtype).reshape(N, H, W * Cin)
    out = _residual_block_rowflat(x, prepared, W=W)
    Cout = out.shape[-1] // W
    return out.reshape(N, H, W, Cout)


# --------------------------------------------------------------------------- #
# Params init (deterministic, PyTorch-style uniform fan-in bounds)
# --------------------------------------------------------------------------- #
def init_residual_block_params(key, in_ch, out_ch, k, learnable_shortcut=None):
    if learnable_shortcut is None:
        learnable_shortcut = in_ch != out_ch

    def conv_init(key, kk, cin, cout):
        kw, kb = jax.random.split(key)
        bound = 1.0 / np.sqrt(cin * kk * kk)
        w = jax.random.uniform(kw, (kk, kk, cin, cout), jnp.float32, -bound, bound)
        b = jax.random.uniform(kb, (cout,), jnp.float32, -bound, bound)
        return w, b

    k_sc, k1, k2 = jax.random.split(key, 3)
    params = {}
    if learnable_shortcut:
        w_sc, b_sc = conv_init(k_sc, 1, in_ch, out_ch)        # conv_shortcut (1x1)
        params["w_sc"], params["b_sc"] = w_sc, b_sc
    w1, b1 = conv_init(k1, k, in_ch, out_ch)                  # conv1 (kxk)
    w2, b2 = conv_init(k2, k, out_ch, out_ch)                 # conv2 (kxk)
    params.update(w1=w1, b1=b1, w2=w2, b2=b2)
    return params


# --------------------------------------------------------------------------- #
# Pure-JAX f32 reference (correctness check)
# --------------------------------------------------------------------------- #
def _conv_ref(x_nhwc, w_hwio, b):
    y = jax.lax.conv_general_dilated(
        x_nhwc, w_hwio, window_strides=(1, 1), padding="SAME",
        dimension_numbers=("NHWC", "HWIO", "NHWC"))
    return y + b


def residual_block_ref(x_nchw, params):
    x = jnp.transpose(x_nchw, (0, 2, 3, 1))
    if "w_sc" in params:
        shortcut = _conv_ref(x, params["w_sc"], params["b_sc"])
    else:
        shortcut = x
    h = _conv_ref(jnp.maximum(x, 0.0), params["w1"], params["b1"])
    out = _conv_ref(jnp.maximum(h, 0.0), params["w2"], params["b2"])
    return jnp.transpose(shortcut + out, (0, 3, 1, 2))


if __name__ == "__main__":
    key = jax.random.PRNGKey(0)
    k_x1, k_p1, k_x2, k_p2 = jax.random.split(key, 4)
    fwd = jax.jit(residual_block_forward)
    fwd_nhwc = jax.jit(residual_block_forward_nhwc)

    # Case 1: in_channels != out_channels -> learnable 1x1 shortcut.
    N, C_IN, C_OUT, H, W, K = 2, 4, 8, 16, 16, 3
    x1 = jax.random.normal(k_x1, (N, C_IN, H, W), jnp.float32)      # NCHW like PyTorch
    p1 = init_residual_block_params(k_p1, C_IN, C_OUT, K)
    prep1 = prepare_residual_block_params(p1, W)                    # built once, reused
    y1 = jax.block_until_ready(fwd(x1, prep1))
    y1_ref = residual_block_ref(x1, p1)
    assert y1.shape == (N, C_OUT, H, W)
    np.testing.assert_allclose(np.asarray(y1.astype(jnp.float32)),
                               np.asarray(y1_ref), rtol=5e-2, atol=5e-2)

    # Same params via the transpose-free NHWC entry point.
    y1n = jax.block_until_ready(fwd_nhwc(jnp.transpose(x1, (0, 2, 3, 1)), prep1))
    np.testing.assert_allclose(
        np.asarray(jnp.transpose(y1n, (0, 3, 1, 2)).astype(jnp.float32)),
        np.asarray(y1_ref), rtol=5e-2, atol=5e-2)

    # Case 2: in_channels == out_channels -> identity shortcut.
    x2 = jax.random.normal(k_x2, (N, C_OUT, H, W), jnp.float32)
    p2 = init_residual_block_params(k_p2, C_OUT, C_OUT, K, learnable_shortcut=False)
    prep2 = prepare_residual_block_params(p2, W)
    y2 = jax.block_until_ready(fwd(x2, prep2))
    y2_ref = residual_block_ref(x2, p2)
    assert y2.shape == (N, C_OUT, H, W)
    np.testing.assert_allclose(np.asarray(y2.astype(jnp.float32)),
                               np.asarray(y2_ref), rtol=5e-2, atol=5e-2)

    print("KERNEL_OK")
</pallas_src>

<mosaic_0001>
module attributes {stable_mosaic.version = 11 : i64} {
  func.func @_resblock_kernel(%arg0: i32, %arg1: memref<2x16x64xbf16, #tpu.memory_space<vmem>>, %arg2: memref<64x128xbf16, #tpu.memory_space<vmem>>, %arg3: memref<3x64x128xbf16, #tpu.memory_space<vmem>>, %arg4: memref<3x128x128xbf16, #tpu.memory_space<vmem>>, %arg5: memref<3x128xf32, #tpu.memory_space<vmem>>, %arg6: memref<2x16x128xbf16, #tpu.memory_space<vmem>>, %arg7: memref<2x18x64xbf16, #tpu.memory_space<vmem>>, %arg8: memref<2x18x128xbf16, #tpu.memory_space<vmem>>, %arg9: memref<32x128xf32, #tpu.memory_space<vmem>>) attributes {dimension_semantics = [#tpu.dimension_semantics<parallel>], iteration_bounds = array<i64: 1>, scalar_prefetch = 0 : i64, scratch_operands = 3 : i64, tpu.core_type = #tpu.core_type<tc>, window_params = [{transform_indices = @transform_0, window_bounds = array<i64: 2, 16, 64>}, {pipeline_mode = #tpu.pipeline_mode<synchronous>, transform_indices = @transform_1, window_bounds = array<i64: 64, 128>}, {pipeline_mode = #tpu.pipeline_mode<synchronous>, transform_indices = @transform_2, window_bounds = array<i64: 3, 64, 128>}, {pipeline_mode = #tpu.pipeline_mode<synchronous>, transform_indices = @transform_3, window_bounds = array<i64: 3, 128, 128>}, {pipeline_mode = #tpu.pipeline_mode<synchronous>, transform_indices = @transform_4, window_bounds = array<i64: 3, 128>}, {transform_indices = @transform_5, window_bounds = array<i64: 2, 16, 128>}]} {
    %c0 = arith.constant 0 : index
    %c0_0 = arith.constant 0 : index
    %c0_1 = arith.constant 0 : index
    %0 = vector.load %arg1[%c0, %c0_0, %c0_1] : memref<2x16x64xbf16, #tpu.memory_space<vmem>>, vector<2x16x64xbf16>
    %1 = vector.shape_cast %0 : vector<2x16x64xbf16> to vector<32x64xbf16>
    %c0_2 = arith.constant 0 : index
    %c0_3 = arith.constant 0 : index
    %2 = vector.load %arg2[%c0_2, %c0_3] : memref<64x128xbf16, #tpu.memory_space<vmem>>, vector<64x128xbf16>
    %cst = arith.constant dense<0.000000e+00> : vector<32x128xf32>
    %3 = tpu.matmul %1, %2, %cst {dimension_numbers = #tpu.dot_dimension_numbers<[1], [0], [0], [1], [0, 0, 1, 1], [], []>} : vector<32x64xbf16>, vector<64x128xbf16>, vector<32x128xf32> -> vector<32x128xf32>
    %c0_4 = arith.constant 0 : index
    %c0_5 = arith.constant 0 : index
    %4 = vector.load %arg5[%c0_4, %c0_5] : memref<3x128xf32, #tpu.memory_space<vmem>>, vector<1x128xf32>
    %5 = vector.broadcast %4 : vector<1x128xf32> to vector<32x128xf32>
    %6 = arith.addf %3, %5 : vector<32x128xf32>
    %c0_6 = arith.constant 0 : index
    %c0_7 = arith.constant 0 : index
    %7 = vector.load %arg9[%c0_6, %c0_7] : memref<32x128xf32, #tpu.memory_space<vmem>>, vector<32x128xf32>
    tpu.vector_store %arg9[%c0_6, %c0_7], %6 {strides = array<i32>} : memref<32x128xf32, #tpu.memory_space<vmem>>, vector<32x128xf32>,
    %cst_8 = arith.constant 0.000000e+00 : bf16
    %8 = vector.broadcast %cst_8 : bf16 to vector<32x64xbf16>
    %9 = arith.maximumf %1, %8 : vector<32x64xbf16>
    %cst_9 = arith.constant 0.000000e+00 : bf16
    %10 = vector.broadcast %cst_9 : bf16 to vector<2x1x64xbf16>
    %c0_10 = arith.constant 0 : index
    %c0_11 = arith.constant 0 : index
    %c0_12 = arith.constant 0 : index
    %11 = vector.load %arg7[%c0_10, %c0_11, %c0_12] : memref<2x18x64xbf16, #tpu.memory_space<vmem>>, vector<2x1x64xbf16>
    tpu.vector_store %arg7[%c0_10, %c0_11, %c0_12], %10 {strides = array<i32>} : memref<2x18x64xbf16, #tpu.memory_space<vmem>>, vector<2x1x64xbf16>,
    %c0_13 = arith.constant 0 : index
    %c17 = arith.constant 17 : index
    %c0_14 = arith.constant 0 : index
    %12 = vector.load %arg7[%c0_13, %c17, %c0_14] : memref<2x18x64xbf16, #tpu.memory_space<vmem>>, vector<2x1x64xbf16>
    tpu.vector_store %arg7[%c0_13, %c17, %c0_14], %10 {strides = array<i32>} : memref<2x18x64xbf16, #tpu.memory_space<vmem>>, vector<2x1x64xbf16>,
    %13 = vector.shape_cast %9 : vector<32x64xbf16> to vector<2x16x64xbf16>
    %c0_15 = arith.constant 0 : index
    %c1 = arith.constant 1 : index
    %c0_16 = arith.constant 0 : index
    %14 = vector.load %arg7[%c0_15, %c1, %c0_16] : memref<2x18x64xbf16, #tpu.memory_space<vmem>>, vector<2x16x64xbf16>
    tpu.vector_store %arg7[%c0_15, %c1, %c0_16], %13 {strides = array<i32>} : memref<2x18x64xbf16, #tpu.memory_space<vmem>>, vector<2x16x64xbf16>,
    %c0_17 = arith.constant 0 : index
    %c0_18 = arith.constant 0 : index
    %c0_19 = arith.constant 0 : index
    %15 = vector.load %arg7[%c0_17, %c0_18, %c0_19] : memref<2x18x64xbf16, #tpu.memory_space<vmem>>, vector<2x16x64xbf16>
    %16 = vector.shape_cast %15 : vector<2x16x64xbf16> to vector<32x64xbf16>
    %c0_20 = arith.constant 0 : index
    %c0_21 = arith.constant 0 : index
    %c0_22 = arith.constant 0 : index
    %17 = vector.load %arg3[%c0_20, %c0_21, %c0_22] : memref<3x64x128xbf16, #tpu.memory_space<vmem>>, vector<1x64x128xbf16>
    %18 = vector.shape_cast %17 : vector<1x64x128xbf16> to vector<64x128xbf16>
    %cst_23 = arith.constant dense<0.000000e+00> : vector<32x128xf32>
    %19 = tpu.matmul %16, %18, %cst_23 {dimension_numbers = #tpu.dot_dimension_numbers<[1], [0], [0], [1], [0, 0, 1, 1], [], []>} : vector<32x64xbf16>, vector<64x128xbf16>, vector<32x128xf32> -> vector<32x128xf32>
    %c1_24 = arith.constant 1 : index
    %c0_25 = arith.constant 0 : index
    %c0_26 = arith.constant 0 : index
    %20 = vector.load %arg3[%c1_24, %c0_25, %c0_26] : memref<3x64x128xbf16, #tpu.memory_space<vmem>>, vector<1x64x128xbf16>
    %21 = vector.shape_cast %20 : vector<1x64x128xbf16> to vector<64x128xbf16>
    %cst_27 = arith.constant dense<0.000000e+00> : vector<32x128xf32>
    %22 = tpu.matmul %9, %21, %cst_27 {dimension_numbers = #tpu.dot_dimension_numbers<[1], [0], [0], [1], [0, 0, 1, 1], [], []>} : vector<32x64xbf16>, vector<64x128xbf16>, vector<32x128xf32> -> vector<32x128xf32>
    %23 = arith.addf %19, %22 : vector<32x128xf32>
    %c0_28 = arith.constant 0 : index
    %c2 = arith.constant 2 : index
    %c0_29 = arith.constant 0 : index
    %24 = vector.load %arg7[%c0_28, %c2, %c0_29] : memref<2x18x64xbf16, #tpu.memory_space<vmem>>, vector<2x16x64xbf16>
    %25 = vector.shape_cast %24 : vector<2x16x64xbf16> to vector<32x64xbf16>
    %c2_30 = arith.constant 2 : index
    %c0_31 = arith.constant 0 : index
    %c0_32 = arith.constant 0 : index
    %26 = vector.load %arg3[%c2_30, %c0_31, %c0_32] : memref<3x64x128xbf16, #tpu.memory_space<vmem>>, vector<1x64x128xbf16>
    %27 = vector.shape_cast %26 : vector<1x64x128xbf16> to vector<64x128xbf16>
    %cst_33 = arith.constant dense<0.000000e+00> : vector<32x128xf32>
    %28 = tpu.matmul %25, %27, %cst_33 {dimension_numbers = #tpu.dot_dimension_numbers<[1], [0], [0], [1], [0, 0, 1, 1], [], []>} : vector<32x64xbf16>, vector<64x128xbf16>, vector<32x128xf32> -> vector<32x128xf32>
    %29 = arith.addf %23, %28 : vector<32x128xf32>
    %c1_34 = arith.constant 1 : index
    %c0_35 = arith.constant 0 : index
    %30 = vector.load %arg5[%c1_34, %c0_35] : memref<3x128xf32, #tpu.memory_space<vmem>>, vector<1x128xf32>
    %31 = vector.broadcast %30 : vector<1x128xf32> to vector<32x128xf32>
    %32 = arith.addf %29, %31 : vector<32x128xf32>
    %cst_36 = arith.constant 0.000000e+00 : f32
    %33 = vector.broadcast %cst_36 : f32 to vector<32x128xf32>
    %34 = arith.maximumf %32, %33 : vector<32x128xf32>
    %35 = arith.truncf %34 : vector<32x128xf32> to vector<32x128xbf16>
    %cst_37 = arith.constant 0.000000e+00 : bf16
    %36 = vector.broadcast %cst_37 : bf16 to vector<2x1x128xbf16>
    %c0_38 = arith.constant 0 : index
    %c0_39 = arith.constant 0 : index
    %c0_40 = arith.constant 0 : index
    %37 = vector.load %arg8[%c0_38, %c0_39, %c0_40] : memref<2x18x128xbf16, #tpu.memory_space<vmem>>, vector<2x1x128xbf16>
    tpu.vector_store %arg8[%c0_38, %c0_39, %c0_40], %36 {strides = array<i32>} : memref<2x18x128xbf16, #tpu.memory_space<vmem>>, vector<2x1x128xbf16>,
    %c0_41 = arith.constant 0 : index
    %c17_42 = arith.constant 17 : index
    %c0_43 = arith.constant 0 : index
    %38 = vector.load %arg8[%c0_41, %c17_42, %c0_43] : memref<2x18x128xbf16, #tpu.memory_space<vmem>>, vector<2x1x128xbf16>
    tpu.vector_store %arg8[%c0_41, %c17_42, %c0_43], %36 {strides = array<i32>} : memref<2x18x128xbf16, #tpu.memory_space<vmem>>, vector<2x1x128xbf16>,
    %39 = vector.shape_cast %35 : vector<32x128xbf16> to vector<2x16x128xbf16>
    %c0_44 = arith.constant 0 : index
    %c1_45 = arith.constant 1 : index
    %c0_46 = arith.constant 0 : index
    %40 = vector.load %arg8[%c0_44, %c1_45, %c0_46] : memref<2x18x128xbf16, #tpu.memory_space<vmem>>, vector<2x16x128xbf16>
    tpu.vector_store %arg8[%c0_44, %c1_45, %c0_46], %39 {strides = array<i32>} : memref<2x18x128xbf16, #tpu.memory_space<vmem>>, vector<2x16x128xbf16>,
    %c0_47 = arith.constant 0 : index
    %c0_48 = arith.constant 0 : index
    %c0_49 = arith.constant 0 : index
    %41 = vector.load %arg8[%c0_47, %c0_48, %c0_49] : memref<2x18x128xbf16, #tpu.memory_space<vmem>>, vector<2x16x128xbf16>
    %42 = vector.shape_cast %41 : vector<2x16x128xbf16> to vector<32x128xbf16>
    %c0_50 = arith.constant 0 : index
    %c0_51 = arith.constant 0 : index
    %43 = vector.load %arg9[%c0_50, %c0_51] : memref<32x128xf32, #tpu.memory_space<vmem>>, vector<32x128xf32>
    %c0_52 = arith.constant 0 : index
    %c0_53 = arith.constant 0 : index
    %c0_54 = arith.constant 0 : index
    %44 = vector.load %arg4[%c0_52, %c0_53, %c0_54] : memref<3x128x128xbf16, #tpu.memory_space<vmem>>, vector<1x128x128xbf16>
    %45 = vector.shape_cast %44 : vector<1x128x128xbf16> to vector<128x128xbf16>
    %cst_55 = arith.constant dense<0.000000e+00> : vector<32x128xf32>
    %46 = tpu.matmul %42, %45, %cst_55 {dimension_numbers = #tpu.dot_dimension_numbers<[1], [0], [0], [1], [0, 0, 1, 1], [], []>} : vector<32x128xbf16>, vector<128x128xbf16>, vector<32x128xf32> -> vector<32x128xf32>
    %47 = arith.addf %43, %46 : vector<32x128xf32>
    %c0_56 = arith.constant 0 : index
    %c0_57 = arith.constant 0 : index
    %48 = vector.load %arg9[%c0_56, %c0_57] : memref<32x128xf32, #tpu.memory_space<vmem>>, vector<32x128xf32>
    tpu.vector_store %arg9[%c0_56, %c0_57], %47 {strides = array<i32>} : memref<32x128xf32, #tpu.memory_space<vmem>>, vector<32x128xf32>,
    %c0_58 = arith.constant 0 : index
    %c0_59 = arith.constant 0 : index
    %49 = vector.load %arg9[%c0_58, %c0_59] : memref<32x128xf32, #tpu.memory_space<vmem>>, vector<32x128xf32>
    %c1_60 = arith.constant 1 : index
    %c0_61 = arith.constant 0 : index
    %c0_62 = arith.constant 0 : index
    %50 = vector.load %arg4[%c1_60, %c0_61, %c0_62] : memref<3x128x128xbf16, #tpu.memory_space<vmem>>, vector<1x128x128xbf16>
    %51 = vector.shape_cast %50 : vector<1x128x128xbf16> to vector<128x128xbf16>
    %cst_63 = arith.constant dense<0.000000e+00> : vector<32x128xf32>
    %52 = tpu.matmul %35, %51, %cst_63 {dimension_numbers = #tpu.dot_dimension_numbers<[1], [0], [0], [1], [0, 0, 1, 1], [], []>} : vector<32x128xbf16>, vector<128x128xbf16>, vector<32x128xf32> -> vector<32x128xf32>
    %53 = arith.addf %49, %52 : vector<32x128xf32>
    %c0_64 = arith.constant 0 : index
    %c0_65 = arith.constant 0 : index
    %54 = vector.load %arg9[%c0_64, %c0_65] : memref<32x128xf32, #tpu.memory_space<vmem>>, vector<32x128xf32>
    tpu.vector_store %arg9[%c0_64, %c0_65], %53 {strides = array<i32>} : memref<32x128xf32, #tpu.memory_space<vmem>>, vector<32x128xf32>,
    %c0_66 = arith.constant 0 : index
    %c2_67 = arith.constant 2 : index
    %c0_68 = arith.constant 0 : index
    %55 = vector.load %arg8[%c0_66, %c2_67, %c0_68] : memref<2x18x128xbf16, #tpu.memory_space<vmem>>, vector<2x16x128xbf16>
    %56 = vector.shape_cast %55 : vector<2x16x128xbf16> to vector<32x128xbf16>
    %c0_69 = arith.constant 0 : index
    %c0_70 = arith.constant 0 : index
    %57 = vector.load %arg9[%c0_69, %c0_70] : memref<32x128xf32, #tpu.memory_space<vmem>>, vector<32x128xf32>
    %c2_71 = arith.constant 2 : index
    %c0_72 = arith.constant 0 : index
    %c0_73 = arith.constant 0 : index
    %58 = vector.load %arg4[%c2_71, %c0_72, %c0_73] : memref<3x128x128xbf16, #tpu.memory_space<vmem>>, vector<1x128x128xbf16>
    %59 = vector.shape_cast %58 : vector<1x128x128xbf16> to vector<128x128xbf16>
    %cst_74 = arith.constant dense<0.000000e+00> : vector<32x128xf32>
    %60 = tpu.matmul %56, %59, %cst_74 {dimension_numbers = #tpu.dot_dimension_numbers<[1], [0], [0], [1], [0, 0, 1, 1], [], []>} : vector<32x128xbf16>, vector<128x128xbf16>, vector<32x128xf32> -> vector<32x128xf32>
    %61 = arith.addf %57, %60 : vector<32x128xf32>
    %c0_75 = arith.constant 0 : index
    %c0_76 = arith.constant 0 : index
    %62 = vector.load %arg9[%c0_75, %c0_76] : memref<32x128xf32, #tpu.memory_space<vmem>>, vector<32x128xf32>
    tpu.vector_store %arg9[%c0_75, %c0_76], %61 {strides = array<i32>} : memref<32x128xf32, #tpu.memory_space<vmem>>, vector<32x128xf32>,
    %c0_77 = arith.constant 0 : index
    %c0_78 = arith.constant 0 : index
    %63 = vector.load %arg9[%c0_77, %c0_78] : memref<32x128xf32, #tpu.memory_space<vmem>>, vector<32x128xf32>
    %c2_79 = arith.constant 2 : index
    %c0_80 = arith.constant 0 : index
    %64 = vector.load %arg5[%c2_79, %c0_80] : memref<3x128xf32, #tpu.memory_space<vmem>>, vector<1x128xf32>
    %65 = vector.broadcast %64 : vector<1x128xf32> to vector<32x128xf32>
    %66 = arith.addf %63, %65 : vector<32x128xf32>
    %67 = vector.shape_cast %66 : vector<32x128xf32> to vector<2x16x128xf32>
    %68 = arith.truncf %67 : vector<2x16x128xf32> to vector<2x16x128xbf16>
    %c0_81 = arith.constant 0 : index
    %c0_82 = arith.constant 0 : index
    %c0_83 = arith.constant 0 : index
    %69 = vector.load %arg6[%c0_81, %c0_82, %c0_83] : memref<2x16x128xbf16, #tpu.memory_space<vmem>>, vector<2x16x128xbf16>
    tpu.vector_store %arg6[%c0_81, %c0_82, %c0_83], %68 {strides = array<i32>} : memref<2x16x128xbf16, #tpu.memory_space<vmem>>, vector<2x16x128xbf16>,
    return
  }
  func.func @transform_0(%arg0: i32) -> (i32, i32, i32) {
    %c0_i32 = arith.constant 0 : i32
    %c0_i32_0 = arith.constant 0 : i32
    %c0_i32_1 = arith.constant 0 : i32
    return %arg0, %c0_i32, %c0_i32_0 : i32, i32, i32
  }
  func.func @transform_1(%arg0: i32) -> (i32, i32) {
    %c0_i32 = arith.constant 0 : i32
    %c0_i32_0 = arith.constant 0 : i32
    %c0_i32_1 = arith.constant 0 : i32
    return %c0_i32, %c0_i32_0 : i32, i32
  }
  func.func @transform_2(%arg0: i32) -> (i32, i32, i32) {
    %c0_i32 = arith.constant 0 : i32
    %c0_i32_0 = arith.constant 0 : i32
    %c0_i32_1 = arith.constant 0 : i32
    %c0_i32_2 = arith.constant 0 : i32
    return %c0_i32, %c0_i32_0, %c0_i32_1 : i32, i32, i32
  }
  func.func @transform_3(%arg0: i32) -> (i32, i32, i32) {
    %c0_i32 = arith.constant 0 : i32
    %c0_i32_0 = arith.constant 0 : i32
    %c0_i32_1 = arith.constant 0 : i32
    %c0_i32_2 = arith.constant 0 : i32
    return %c0_i32, %c0_i32_0, %c0_i32_1 : i32, i32, i32
  }
  func.func @transform_4(%arg0: i32) -> (i32, i32) {
    %c0_i32 = arith.constant 0 : i32
    %c0_i32_0 = arith.constant 0 : i32
    %c0_i32_1 = arith.constant 0 : i32
    return %c0_i32, %c0_i32_0 : i32, i32
  }
  func.func @transform_5(%arg0: i32) -> (i32, i32, i32) {
    %c0_i32 = arith.constant 0 : i32
    %c0_i32_0 = arith.constant 0 : i32
    %c0_i32_1 = arith.constant 0 : i32
    return %arg0, %c0_i32, %c0_i32_0 : i32, i32, i32
  }
}

</mosaic_0001>

<bundles_post_ra>
// kernel: residual_block_forward.1
= control target key start
LH: loop header
LB: loop body
LE: loop exit
PB: predicated region body
PF: predicated region fallthrough
CT: control target
= control target key end

     0   :  { %vm111_vm0 = vcmask 516096   ;;  %vm112_vm1 = vsmask.f32 256  ;;  %v114_v3 = vld [vmem:[#allocation2] sm:$0x1]  ;;  %vm170_vm6 = vcmask 519168   ;;  %s1490_s2 = inlined_call_operand.vmem [shape: bf16[3,64,128], index: 2, kind: input, shape index: {}]   ;;  %s1491_s0 = inlined_call_operand.vmem [shape: bf16[2,16,64], index: 0, kind: input, shape index: {}]   ;;  %s1492_s1 = inlined_call_operand.vmem [shape: bf16[64,128], index: 1, kind: input, shape index: {}]   ;;  %s1493_s4 = inlined_call_operand.vmem [shape: f32[3,128], index: 4, kind: input, shape index: {}]   ;;  %s1494_s3 = inlined_call_operand.vmem [shape: bf16[3,128,128], index: 3, kind: input, shape index: {}]   ;;  %s1495_s5 = inlined_call_operand.vmem [shape: bf16[2,16,128], index: 5, kind: output, shape index: {}]  }
   0x1   :  { %v1134_v0 = vld [vmem:[%s1490_s2 + $0x18] sm:$0xff]  ;;  %vm120_vm2 = vsmask.f32 7938  ;;  %v1133_v4 = vld [vmem:[%s1490_s2 + $0x10] sm:$0xff]  ;;  %v21_v7 = vld [vmem:[%s1491_s0] sm:$0xff]   ;;  %vm69_vm9 = vcmask 523264  }
   0x2   :  { %v1138_v1 = vld [vmem:[%s1490_s2 + $0x38] sm:$0xff]  ;;  %311 = vmatpush.bf16.msra.mxu2 %v1134_v0  ;;  %v1137_v5 = vld [vmem:[%s1490_s2 + $0x30] sm:$0xff]  ;;  %vm1244_vm3 = vmand %vm111_vm0, %vm112_vm1  ;;  %v99_v9 = vunpack.c.l.bf16 %v21_v7  ;;  %v100_v10 = vunpack.c.h.bf16 %v21_v7  ;;  %vm128_vm5 = vsmask.f32 4368  ;;  %vm338_vm10 = vcmask 1042432  }
   0x3   :  { %v1142_v2 = vld [vmem:[%s1490_s2 + $0x58] sm:$0xff]  ;;  %252 = vmatpush.bf16.msra.mxu1 %v1138_v1  ;;  %v1141_v6 = vld [vmem:[%s1490_s2 + $0x50] sm:$0xff]  ;;  %v115_v11 = vsel %vm1244_vm3, 0, %v114_v3  ;;  %vm1252_vm4 = vmand %vm111_vm0, %vm120_vm2  ;;  %vm339_vm11 = vcmask 1046532   ;;  %vm437_vm13 = vcmask 1040384   ;;  %vm492_vm0 = vcmask 1043456  }
   0x4   :  { %404 = vmatpush.bf16.msra.mxu3 %v1142_v2  ;;  %v1132_v13 = vld [vmem:[%s1490_s2 + $0x8] sm:$0xff]  ;;  %116 = vst [vmem:[#allocation2] sm:$0x1] %v115_v11  ;;  %v103_v17 = vmax.f32 %v99_v9, 0.0  ;;  %v104_v18 = vmax.f32 %v100_v10, 0.0  ;;  %v1131_v31 = vld [vmem:[%s1490_s2] sm:$0xff]  ;;  %vm1287_vm7 = vmor %vm112_vm1, %vm128_vm5 }
   0x5   :  { %v122_v14 = vld [vmem:[#allocation2 + $0x8] sm:$0x1]  ;;  %v117_v21 = vld [vmem:[#allocation2 + $0xc] sm:$0x1]  ;;  %v125_v25 = vld [vmem:[#allocation2 + $0x14] sm:$0x1] }
   0x6   :  { %v23_v15 = vld [vmem:[%s1491_s0 + $0x8] sm:$0xff]   ;;  %312 = vmatpush.bf16.msra.mxu2 %v1133_v4  ;;  %v123_v19 = vsel %vm1252_vm4, 0, %v122_v14  ;;  %v118_v24 = vsel %vm1244_vm3, 0, %v117_v21  ;;  %v107_v26 = vpack.c.bf16 %v103_v17, %v103_v17  ;;  %v108_v27 = vpack.c.bf16 %v104_v18, %v104_v18  ;;  %v1135_v32 = vld [vmem:[%s1490_s2 + $0x20] sm:$0xff]  ;;  %vm1293_vm8 = vmand %vm170_vm6, %vm120_vm2 }
   0x7   :  { %253 = vmatpush.bf16.msra.mxu1 %v1137_v5  ;;  %v1136_v16 = vld [vmem:[%s1490_s2 + $0x28] sm:$0xff]  ;;  %v101_v20 = vunpack.c.l.bf16 %v23_v15  ;;  %124 = vst [vmem:[#allocation2 + $0x8] sm:$0x1] %v123_v19  ;;  %v102_v23 = vunpack.c.h.bf16 %v23_v15  ;;  %v126_v29 = vsel %vm1252_vm4, 0, %v125_v25  ;;  %v1139_v39 = vld [vmem:[%s1490_s2 + $0x40] sm:$0xff]  ;;  %v1128_v7 = vld [vmem:[%s1492_s1 + $0x18] sm:$0xff] }
   0x8   :  { %405 = vmatpush.bf16.msra.mxu3 %v1141_v6  ;;  %v1140_v22 = vld [vmem:[%s1490_s2 + $0x48] sm:$0xff]  ;;  %119 = vst [vmem:[#allocation2 + $0xc] sm:$0x1] %v118_v24  ;;  %v131_v33 = vshrl.u32 %v107_v26, 16  ;;  %v134_v34 = vshll.u32 %v107_v26, 16  ;;  %v139_v35 = vshrl.u32 %v108_v27, 16  ;;  %v212_v37 = vunpack.c.l.b16 %v107_v26  ;;  %80 = vmatpush.bf16.msra.mxu0 %v1128_v7  ;;  %vm1317_vm12 = vmor %vm338_vm10, %vm339_vm11 }
   0x9   :  { %v105_v28 = vmax.f32 %v101_v20, 0.0  ;;  %v106_v30 = vmax.f32 %v102_v23, 0.0  ;;  %127 = vst [vmem:[#allocation2 + $0x14] sm:$0x1] %v126_v29  ;;  %v142_v36 = vshll.u32 %v108_v27, 16  ;;  %v213_v38 = vunpack.c.l.b16 %v108_v27  ;;  %v1123_v45 = vld [vmem:[%s1491_s0] sm:$0xff]  ;;  %vm1371_vm14 = vmand %vm437_vm13, %vm112_vm1 }
   0xa   :  { %313 = vmatpush.bf16.msra.mxu2 %v1132_v13  ;;  %v133_v43 = vrot.slane %v131_v33, 7  ;;  %v141_v44 = vrot.slane %v139_v35, 7  ;;  %vm1388_vm15 = vmand %vm437_vm13, %vm120_vm2 }
   0xb   :  { %254 = vmatpush.bf16.msra.mxu1 %v1136_v16  ;;  %v1283_v40 = vpack.c.bf16 %v105_v28, %v105_v28  ;;  %v110_v41 = vpack.c.bf16 %v106_v30, %v106_v30  ;;  %v172_v46 = vld [vmem:[#allocation2] sm:$0xf]  ;;  %v216_v47 = vpack.c.b16 %v213_v38, %v212_v37  ;;  %v1160_v38 = vld [vmem:[%s1494_s3 + $0x78] sm:$0xff]  ;;  %vm1452_vm1 = vmand %vm492_vm0, %vm120_vm2 }
   0xc   :  { %406 = vmatpush.bf16.msra.mxu3 %v1140_v22  ;;  %v136_v51 = vor.u32 %v134_v34, %v133_v43  ;;  %v137_v52 = vrot.slane %v133_v43, 4  ;;  %v144_v53 = vor.u32 %v142_v36, %v141_v44  ;;  %v146_v54 = vrot.slane %v141_v44, 4  ;;  %v1158_v43 = vld [vmem:[%s1494_s3 + $0x68] sm:$0xff]  ;;  %v1125_v44 = vld [vmem:[%s1492_s1] sm:$0xff] }
   0xd   :  { %v148_v48 = vshrl.u32 %v1283_v40, 16  ;;  %v151_v49 = vshll.u32 %v1283_v40, 16  ;;  %v156_v50 = vshrl.u32 %v110_v41, 16  ;;  %v159_v58 = vshll.u32 %v110_v41, 16 }
   0xe   :  { %314 = vmatpush.bf16.msra.mxu2 %v1131_v31  ;;  %v177_v55 = vld [vmem:[#allocation2 + $0x8] sm:$0x1]  ;;  %v145_v59 = vsel %vm1287_vm7, %v137_v52, %v144_v53  ;;  %v173_v60 = vsel %vm1293_vm8, %v136_v51, %v172_v46  ;;  %v214_v13 = vunpack.c.l.b16 %v1283_v40  ;;  %v215_v14 = vunpack.c.l.b16 %v110_v41  ;;  %v1159_v40 = vld [vmem:[%s1494_s3 + $0x70] sm:$0xff]  ;;  %v1157_v46 = vld [vmem:[%s1494_s3 + $0x60] sm:$0xff] }
   0xf   :  { %255 = vmatpush.bf16.msra.mxu1 %v1135_v32  ;;  %v150_v56 = vrot.slane %v148_v48, 7  ;;  %v158_v57 = vrot.slane %v156_v50, 7  ;;  %v178_v61 = vsel %vm1244_vm3, %v146_v54, %v177_v55  ;;  %v180_v62 = vld [vmem:[#allocation2 + $0xc] sm:$0xf]  ;;  %174 = vst [vmem:[#allocation2] sm:$0xf] %v173_v60 }
  0x10   :  { %407 = vmatpush.bf16.msra.mxu3 %v1139_v39  ;;  %v184_v63 = vld [vmem:[#allocation2 + $0x14] sm:$0x1]  ;;  %176 = vst.msk [vmem:[#allocation2 + $0x4] sm:$0xf] %vm170_vm6, %v145_v59  ;;  %v217_v22 = vpack.c.b16 %v215_v14, %v214_v13  ;;  %v1126_v41 = vld [vmem:[%s1492_s1 + $0x8] sm:$0xff]  ;;  %v1156_v48 = vld [vmem:[%s1494_s3 + $0x58] sm:$0xff] }
  0x11   :  { %v153_v0 = vor.u32 %v151_v49, %v150_v56  ;;  %v154_v1 = vrot.slane %v150_v56, 4  ;;  %v161_v2 = vor.u32 %v159_v58, %v158_v57  ;;  %v163_v3 = vrot.slane %v158_v57, 4  ;;  %179 = vst [vmem:[#allocation2 + $0x8] sm:$0x1] %v178_v61  ;;  %v1127_v39 = vld [vmem:[%s1492_s1 + $0x10] sm:$0xff]  ;;  %v1168_v53 = vld [vmem:[%s1494_s3 + $0xb8] sm:$0xff] }
  0x12   :  { %929 = vmatmul.msk.bf16.vlgmr.msra.gmra.mxu1 %vm69_vm9, %v216_v47  ;;  %81 = vmatpush.bf16.msra.mxu0 %v1127_v39  ;;  %v1152_v47 = vld [vmem:[%s1494_s3 + $0x38] sm:$0xff]  ;;  %v1151_v49 = vld [vmem:[%s1494_s3 + $0x30] sm:$0xff]  ;;  %v1150_v55 = vld [vmem:[%s1494_s3 + $0x28] sm:$0xff] }
  0x13   :  { %v162_v4 = vsel %vm1287_vm7, %v154_v1, %v161_v2  ;;  %v181_v5 = vsel %vm1293_vm8, %v153_v0, %v180_v62  ;;  %v185_v6 = vsel %vm1244_vm3, %v163_v3, %v184_v63  ;;  %700 = vmatpush.bf16.msrb.mxu1 %v1160_v38  ;;  %v439_v51 = vld [vmem:[#allocation3] sm:$0x1]  ;;  %v1155_v54 = vld [vmem:[%s1494_s3 + $0x50] sm:$0xff]  ;;  %830 = vmatpush.bf16.msrb.mxu2 %v1168_v53  ;;  %v446_v57 = vld [vmem:[#allocation3 + $0x8] sm:$0x1] }
  0x14   :  { %182 = vst [vmem:[#allocation2 + $0xc] sm:$0xf] %v181_v5  ;;  %1180 = vmatpush.bf16.msrb.mxu3 %v1152_v47  ;;  %v440_v52 = vsel %vm1371_vm14, 0, %v439_v51  ;;  %v1167_v58 = vld [vmem:[%s1494_s3 + $0xb0] sm:$0xff]  ;;  %v447_v59 = vsel %vm1388_vm15, 0, %v446_v57  ;;  %v1154_v60 = vld [vmem:[%s1494_s3 + $0x48] sm:$0xff] }
  0x15   :  { %183 = vst.msk [vmem:[#allocation2 + $0x10] sm:$0xf] %vm170_vm6, %v162_v4  ;;  %v1149_v61 = vld [vmem:[%s1494_s3 + $0x20] sm:$0xff]  ;;  %v1124_v62 = vld [vmem:[%s1491_s0 + $0x8] sm:$0xff]  ;;  %v1148_v1 = vld [vmem:[%s1494_s3 + $0x18] sm:$0xff] }
  0x16   :  { %186 = vst [vmem:[#allocation2 + $0x14] sm:$0x1] %v185_v6  ;;  %v326_v9 = vld [vmem:[#allocation2] sm:$0xe]  ;;  %82 = vmatpush.bf16.msra.mxu0 %v1126_v41  ;;  %v1166_v63 = vld [vmem:[%s1494_s3 + $0xa8] sm:$0xff]  ;;  %v1147_v3 = vld [vmem:[%s1494_s3 + $0x10] sm:$0xff] }
  0x17   :  { %v1129_v10 = vld [vmem:[#allocation2] sm:$0xff]  ;;  %v957_v8 = vrot.slane %v326_v9, 9  ;;  %701 = vmatpush.bf16.msrb.mxu1 %v1159_v40  ;;  %441 = vst [vmem:[#allocation3] sm:$0x1] %v440_v52  ;;  %831 = vmatpush.bf16.msrb.mxu2 %v1167_v58  ;;  %v1164_v9 = vld [vmem:[%s1494_s3 + $0x98] sm:$0xff] }
  0x18   :  { %v327_v11 = vld [vmem:[#allocation2 + $0x4] sm:$0xf]  ;;  %v328_v15 = vld [vmem:[#allocation2 + $0x8] sm:$0x1]  ;;  %955 = vmatmul.msk.bf16.vlgmr.msra.gmra.mxu2 %vm69_vm9, %v1129_v10  ;;  %1181 = vmatpush.bf16.msrb.mxu3 %v1151_v49  ;;  %448 = vst [vmem:[#allocation3 + $0x8] sm:$0x1] %v447_v59 }
  0x19   :  { %v343_v16 = vrot.slane %v327_v11, 5  ;;  %v346_v17 = vrot.slane %v328_v15, 5  ;;  %v1153_v0 = vld [vmem:[%s1494_s3 + $0x40] sm:$0xff]  ;;  %v1146_v10 = vld [vmem:[%s1494_s3 + $0x8] sm:$0xff] }
  0x1a   :  { %83 = vmatpush.bf16.msra.mxu0 %v1125_v44  ;;  %v1165_v2 = vld [vmem:[%s1494_s3 + $0xa0] sm:$0xff]  ;;  %v449_v14 = vld [vmem:[#allocation3 + $0x14] sm:$0x1] }
  0x1b   :  { %v344_v18 = vsel %vm1317_vm12, %v957_v8, %v343_v16  ;;  %v345_v19 = vrot.slane %v343_v16, 4  ;;  %v329_v27 = vld [vmem:[#allocation2 + $0xc] sm:$0xe]  ;;  %702 = vmatpush.bf16.msrb.mxu1 %v1158_v43  ;;  %832 = vmatpush.bf16.msrb.mxu2 %v1166_v63  ;;  %v442_v4 = vld [vmem:[#allocation3 + $0xc] sm:$0x1]  ;;  %v1163_v8 = vld [vmem:[%s1494_s3 + $0x90] sm:$0xff] }
  0x1c   :  { %v330_v20 = vld [vmem:[#allocation2 + $0x10] sm:$0xf]  ;;  %v364_v21 = vunpack.c.l.b16 %v344_v18  ;;  %v958_v29 = vrot.slane %v329_v27, 9  ;;  %1182 = vmatpush.bf16.msrb.mxu3 %v1150_v55  ;;  %v443_v5 = vsel %vm1371_vm14, 0, %v442_v4  ;;  %v1145_v13 = vld [vmem:[%s1494_s3] sm:$0xff]  ;;  %v450_v16 = vsel %vm1388_vm15, 0, %v449_v14 }
  0x1d   :  { %v347_v23 = vsel %vm1317_vm12, %v345_v19, %v346_v17  ;;  %v350_v25 = vrot.slane %v330_v20, 5  ;;  %v331_v28 = vld [vmem:[#allocation2 + $0x14] sm:$0x1]  ;;  %v1130_v32 = vld [vmem:[#allocation2 + $0xc] sm:$0xff]  ;;  %903 = vmatmul.msk.bf16.vlgmr.msra.gmra.mxu0 %vm69_vm9, %v1123_v45  ;;  %444 = vst [vmem:[#allocation3 + $0xc] sm:$0x1] %v443_v5 }
  0x1e   :  { %v365_v24 = vunpack.c.l.b16 %v347_v23  ;;  %v353_v31 = vrot.slane %v331_v28, 5  ;;  %592 = vmatpush.bf16.msrb.mxu0 %v1152_v47  ;;  %v1439_v15 = vld [vmem:[%s1493_s4 + $0x1] ss:$0 sm:$0xff]  ;;  %451 = vst [vmem:[#allocation3 + $0x14] sm:$0x1] %v450_v16  ;;  %v1162_v20 = vld [vmem:[%s1494_s3 + $0x88] sm:$0xff] }
  0x1f   :  { %v352_v30 = vrot.slane %v350_v25, 4  ;;  %v351_v33 = vsel %vm1317_vm12, %v958_v29, %v350_v25  ;;  %703 = vmatpush.bf16.msrb.mxu1 %v1157_v46  ;;  %833 = vmatpush.bf16.msrb.mxu2 %v1165_v2  ;;  %v498_v52 = vld [vmem:[#allocation3 + $0x8] sm:$0x1] }
  0x20   :  { %v368_v26 = vpack.c.b16 %v365_v24, %v364_v21  ;;  %v366_v35 = vunpack.c.l.b16 %v351_v33  ;;  %1183 = vmatpush.bf16.msrb.mxu3 %v1149_v61  ;;  %v1161_v24 = vld [vmem:[%s1494_s3 + $0x80] sm:$0xff] }
  0x21   :  { %v354_v34 = vsel %vm1317_vm12, %v352_v30, %v353_v31 }
  0x22   :  { %930 = vmatmul.msk.bf16.gmra.mxu1 %vm69_vm9, %v217_v22  ;;  %983 = vmatmul.msk.bf16.vlgmr.msra.gmra.mxu3 %vm69_vm9, %v368_v26  ;;  %v367_v36 = vunpack.c.l.b16 %v354_v34 }
  0x23   :  { %704 = vmatpush.bf16.msrb.mxu1 %v1156_v48  ;;  %593 = vmatpush.bf16.msrb.mxu0 %v1151_v49 }
  0x24   :  { %v369_v37 = vpack.c.b16 %v367_v36, %v366_v35  ;;  %1184 = vmatpush.bf16.msrb.mxu3 %v1148_v1  ;;  %834 = vmatpush.bf16.msrb.mxu2 %v1164_v9  ;;  %v494_v35 = vld [vmem:[#allocation3] sm:$0xf] }
  0x27   :  { %705 = vmatpush.bf16.msrb.mxu1 %v1155_v54  ;;  %594 = vmatpush.bf16.msrb.mxu0 %v1150_v55 }
  0x28   :  { %956 = vmatmul.msk.bf16.gmra.mxu2 %vm69_vm9, %v1130_v32  ;;  %1185 = vmatpush.bf16.msrb.mxu3 %v1147_v3 }
  0x29   :  { %835 = vmatpush.bf16.msrb.mxu2 %v1163_v8 }
  0x2b   :  { %706 = vmatpush.bf16.msrb.mxu1 %v1154_v60  ;;  %595 = vmatpush.bf16.msrb.mxu0 %v1149_v61 }
  0x2c   :  { %1186 = vmatpush.bf16.msrb.mxu3 %v1146_v10 }
  0x2d   :  { %904 = vmatmul.msk.bf16.gmra.mxu0 %vm69_vm9, %v1124_v62  ;;  %836 = vmatpush.bf16.msrb.mxu2 %v1162_v20 }
  0x2f   :  { %707 = vmatpush.bf16.msrb.mxu1 %v1153_v0  ;;  %596 = vmatpush.bf16.msrb.mxu0 %v1148_v1 }
  0x30   :  { %1187 = vmatpush.bf16.msrb.mxu3 %v1145_v13 }
  0x31   :  { %837 = vmatpush.bf16.msrb.mxu2 %v1161_v24 }
  0x32   :  { %984 = vmatmul.msk.bf16.gmra.mxu3 %vm69_vm9, %v369_v37 }
  0x33   :  { %597 = vmatpush.bf16.msrb.mxu0 %v1147_v3 }
  0x37   :  { %598 = vmatpush.bf16.msrb.mxu0 %v1146_v10 }
  0x3b   :  { %599 = vmatpush.bf16.msrb.mxu0 %v1145_v13 }
  0x8f   :  { %v257_v6 = vpop.f32.mrf.mxu1 }
  0x97   :  { %v259_v21 = vpop.f32.mrf.mxu1 }
  0x9b   :  { %v316_v7 = vpop.f32.mrf.mxu2 }
  0x9c   :  { %v317_v11 = vadd.f32 %v316_v7, %v257_v6  ;;  %v501_v6 = vld [vmem:[#allocation3 + $0xc] sm:$0xf] }
  0x9f   :  { %v262_v36 = vpop.f32.mrf.mxu1 }
  0xa3   :  { %v318_v18 = vpop.f32.mrf.mxu2 }
  0xa4   :  { %v319_v26 = vadd.f32 %v318_v18, %v259_v21 }
  0xa5   :  { %v409_v17 = vpop.f32.mrf.mxu3 }
  0xa6   :  { %v419_v19 = vadd.f32 %v409_v17, %v317_v11 }
  0xa7   :  { %v264_v59 = vpop.f32.mrf.mxu1 }
  0xa8   :  { %v425_v22 = vadd.f32 %v1439_v15, %v419_v19 }
  0xaa   :  { %v429_v23 = vmax.f32 %v425_v22, 0.0 }
  0xab   :  { %v321_v30 = vpop.f32.mrf.mxu2 }
  0xac   :  { %v433_v25 = vpack.c.bf16 %v429_v23, %v429_v23  ;;  %v322_v39 = vadd.f32 %v321_v30, %v262_v36 }
  0xad   :  { %v411_v27 = vpop.f32.mrf.mxu3 }
  0xae   :  { %v453_v28 = vshrl.u32 %v433_v25, 16  ;;  %v420_v29 = vadd.f32 %v411_v27, %v319_v26  ;;  %v456_v32 = vshll.u32 %v433_v25, 16  ;;  %v644_v46 = vunpack.c.l.b16 %v433_v25 }
  0xb0   :  { %v455_v31 = vrot.slane %v453_v28, 7  ;;  %v426_v33 = vadd.f32 %v1439_v15, %v420_v29  ;;  %v505_v28 = vld [vmem:[#allocation3 + $0x14] sm:$0x1] }
  0xb2   :  { %v458_v37 = vor.u32 %v456_v32, %v455_v31  ;;  %v430_v38 = vmax.f32 %v426_v33, 0.0  ;;  %v459_v55 = vrot.slane %v455_v31, 4 }
  0xb3   :  { %v323_v53 = vpop.f32.mrf.mxu2 }
  0xb4   :  { %v495_v40 = vsel %vm1452_vm1, %v458_v37, %v494_v35  ;;  %v434_v41 = vpack.c.bf16 %v430_v38, %v430_v38  ;;  %v324_v63 = vadd.f32 %v323_v53, %v264_v59 }
  0xb5   :  { %496 = vst [vmem:[#allocation3] sm:$0xf] %v495_v40  ;;  %v414_v43 = vpop.f32.mrf.mxu3 }
  0xb6   :  { %v461_v44 = vshrl.u32 %v434_v41, 16  ;;  %v421_v45 = vadd.f32 %v414_v43, %v322_v39  ;;  %v645_v47 = vunpack.c.l.b16 %v434_v41  ;;  %v464_v49 = vshll.u32 %v434_v41, 16 }
  0xb8   :  { %v463_v48 = vrot.slane %v461_v44, 7  ;;  %v427_v51 = vadd.f32 %v1439_v15, %v421_v45  ;;  %v648_v54 = vpack.c.b16 %v645_v47, %v644_v46 }
  0xba   :  { %v466_v56 = vor.u32 %v464_v49, %v463_v48  ;;  %v468_v57 = vrot.slane %v463_v48, 4  ;;  %v431_v58 = vmax.f32 %v427_v51, 0.0  ;;  %708 = vmatmul.bf16.vlgmr.msrb.gmra.mxu1 %v648_v54  ;;  %v85_v49 = vpop.f32.mrf.mxu0 }
  0xbc   :  { %v467_v60 = vsel %vm1287_vm7, %v459_v55, %v466_v56  ;;  %v499_v61 = vsel %vm1371_vm14, %v468_v57, %v498_v52  ;;  %v435_v62 = vpack.c.bf16 %v431_v58, %v431_v58  ;;  %v727_v10 = vld [vmem:[#allocation3] sm:$0xe]  ;;  %v1189_v56 = vld [vmem:[%s1493_s4] ss:$0 sm:$0xff] }
  0xbd   :  { %497 = vst [vmem:[#allocation3 + $0x4] sm:$0xf] %v467_v60  ;;  %v416_v0 = vpop.f32.mrf.mxu3  ;;  %v1073_v17 = vrot.slane %v727_v10, 9  ;;  %v86_v57 = vadd.f32 %v1189_v56, %v85_v49 }
  0xbe   :  { %500 = vst [vmem:[#allocation3 + $0x8] sm:$0x1] %v499_v61  ;;  %v470_v1 = vshrl.u32 %v435_v62, 16  ;;  %v422_v2 = vadd.f32 %v416_v0, %v324_v63  ;;  %v473_v4 = vshll.u32 %v435_v62, 16  ;;  %v646_v20 = vunpack.c.l.b16 %v435_v62 }
  0xc0   :  { %v472_v3 = vrot.slane %v470_v1, 7  ;;  %v428_v5 = vadd.f32 %v1439_v15, %v422_v2  ;;  %v1190_v1 = vld [vmem:[%s1493_s4 + $0x2] ss:$0 sm:$0xff] }
  0xc2   :  { %v475_v7 = vor.u32 %v473_v4, %v472_v3  ;;  %v432_v9 = vmax.f32 %v428_v5, 0.0  ;;  %v476_v27 = vrot.slane %v472_v3, 4  ;;  %v87_v51 = vpop.f32.mrf.mxu0 }
  0xc3   :  { %v88_v60 = vadd.f32 %v1189_v56, %v87_v51 }
  0xc4   :  { %v502_v11 = vsel %vm1452_vm1, %v475_v7, %v501_v6  ;;  %v436_v8 = vpack.c.bf16 %v432_v9, %v432_v9  ;;  %v1143_v13 = vld [vmem:[#allocation3] sm:$0xff] }
  0xc5   :  { %v728_v14 = vld [vmem:[#allocation3 + $0x4] sm:$0xf]  ;;  %503 = vst [vmem:[#allocation3 + $0xc] sm:$0xf] %v502_v11  ;;  %v729_v16 = vld [vmem:[#allocation3 + $0x8] sm:$0x1]  ;;  %600 = vmatmul.bf16.vlgmr.msrb.gmra.mxu0 %v1143_v13 }
  0xc6   :  { %v741_v18 = vrot.slane %v728_v14, 5  ;;  %v478_v19 = vshrl.u32 %v436_v8, 16  ;;  %v647_v21 = vunpack.c.l.b16 %v436_v8  ;;  %v744_v23 = vrot.slane %v729_v16, 5 }
  0xc7   :  { %v481_v25 = vshll.u32 %v436_v8, 16 }
  0xc8   :  { %v742_v15 = vsel %vm1317_vm12, %v1073_v17, %v741_v18  ;;  %v743_v22 = vrot.slane %v741_v18, 4  ;;  %v480_v24 = vrot.slane %v478_v19, 7  ;;  %v649_v26 = vpack.c.b16 %v647_v21, %v646_v20 }
  0xc9   :  { %v774_v32 = vunpack.c.l.b16 %v742_v15 }
  0xca   :  { %v745_v29 = vsel %vm1317_vm12, %v743_v22, %v744_v23  ;;  %v483_v30 = vor.u32 %v481_v25, %v480_v24  ;;  %v485_v31 = vrot.slane %v480_v24, 4  ;;  %713 = vmatmul.bf16.gmra.mxu1 %v649_v26  ;;  %v90_v52 = vpop.f32.mrf.mxu0 }
  0xcb   :  { %v775_v33 = vunpack.c.l.b16 %v745_v29  ;;  %v91_v11 = vadd.f32 %v1189_v56, %v90_v52 }
  0xcc   :  { %v484_v34 = vsel %vm1287_vm7, %v476_v27, %v483_v30  ;;  %v506_v35 = vsel %vm1371_vm14, %v485_v31, %v505_v28  ;;  %v730_v37 = vld [vmem:[#allocation3 + $0xc] sm:$0xe] }
  0xcd   :  { %v778_v36 = vpack.c.b16 %v775_v33, %v774_v32  ;;  %504 = vst [vmem:[#allocation3 + $0x10] sm:$0xf] %v484_v34  ;;  %v1074_v41 = vrot.slane %v730_v37, 9 }
  0xce   :  { %507 = vst [vmem:[#allocation3 + $0x14] sm:$0x1] %v506_v35 }
  0xcf   :  { %838 = vmatmul.bf16.vlgmr.msrb.gmra.mxu2 %v778_v36 }
  0xd2   :  { %v92_v53 = vpop.f32.mrf.mxu0 }
  0xd3   :  { %v93_v14 = vadd.f32 %v1189_v56, %v92_v53 }
  0xd4   :  { %v1144_v38 = vld [vmem:[#allocation3 + $0xc] sm:$0xff] }
  0xd5   :  { %v731_v39 = vld [vmem:[#allocation3 + $0x10] sm:$0xf]  ;;  %v732_v40 = vld [vmem:[#allocation3 + $0x14] sm:$0x1]  ;;  %605 = vmatmul.bf16.vlgmr.msrb.gmra.mxu3 %v1144_v38 }
  0xd6   :  { %v748_v43 = vrot.slane %v731_v39, 5  ;;  %v751_v42 = vrot.slane %v732_v40, 5 }
  0xd8   :  { %v749_v44 = vsel %vm1317_vm12, %v1074_v41, %v748_v43  ;;  %v750_v45 = vrot.slane %v748_v43, 4 }
  0xd9   :  { %v776_v46 = vunpack.c.l.b16 %v749_v44 }
  0xda   :  { %v752_v50 = vsel %vm1317_vm12, %v750_v45, %v751_v42 }
  0xdb   :  { %v777_v47 = vunpack.c.l.b16 %v752_v50 }
  0xdd   :  { %v779_v48 = vpack.c.b16 %v777_v47, %v776_v46 }
  0xdf   :  { %843 = vmatmul.bf16.gmra.mxu2 %v779_v48 }
 0x137   :  { %v709_v55 = vpop.f32.mrf.mxu1 }
 0x13f   :  { %v711_v61 = vpop.f32.mrf.mxu1 }
 0x142   :  { %v601_v54 = vpop.f32.mrf.mxu0 }
 0x143   :  { %v611_v12 = vadd.f32 %v601_v54, %v86_v57 }
 0x145   :  { %v719_v63 = vadd.f32 %v709_v55, %v611_v12 }
 0x147   :  { %v714_v9 = vpop.f32.mrf.mxu1 }
 0x14a   :  { %v603_v58 = vpop.f32.mrf.mxu0 }
 0x14b   :  { %v612_v62 = vadd.f32 %v603_v58, %v88_v60 }
 0x14d   :  { %v720_v2 = vadd.f32 %v711_v61, %v612_v62 }
 0x14f   :  { %v716_v19 = vpop.f32.mrf.mxu1 }
 0x152   :  { %v839_v59 = vpop.f32.mrf.mxu2 }
 0x153   :  { %v849_v0 = vadd.f32 %v839_v59, %v719_v63 }
 0x155   :  { %v863_v6 = vadd.f32 %v1190_v1, %v849_v0 }
 0x158   :  { %v606_v4 = vpop.f32.mrf.mxu3 }
 0x159   :  { %v613_v16 = vadd.f32 %v606_v4, %v91_v11 }
 0x15a   :  { %v841_v3 = vpop.f32.mrf.mxu2 }
 0x15b   :  { %v850_v5 = vadd.f32 %v841_v3, %v720_v2  ;;  %v721_v18 = vadd.f32 %v714_v9, %v613_v16 }
 0x15d   :  { %v864_v7 = vadd.f32 %v1190_v1, %v850_v5 }
 0x15f   :  { %v1172_v10 = vpack.c.bf16 %v864_v7, %v863_v6 }
 0x160   :  { %v608_v13 = vpop.f32.mrf.mxu3 }
 0x161   :  { %1173 = vst [vmem:[%s1495_s5] sm:$0xff] %v1172_v10   ;;  %v614_v17 = vadd.f32 %v608_v13, %v93_v14 }
 0x162   :  { %v844_v8 = vpop.f32.mrf.mxu2 }
 0x163   :  { %v851_v20 = vadd.f32 %v844_v8, %v721_v18  ;;  %v722_v21 = vadd.f32 %v716_v19, %v614_v17 }
 0x165   :  { %v865_v23 = vadd.f32 %v1190_v1, %v851_v20 }
 0x16a   :  { %v846_v15 = vpop.f32.mrf.mxu2 }
 0x16b   :  { %v852_v22 = vadd.f32 %v846_v15, %v722_v21 }
 0x16d   :  { %v866_v24 = vadd.f32 %v1190_v1, %v852_v22 }
 0x16f   :  { %v1177_v25 = vpack.c.bf16 %v866_v24, %v865_v23 }
 0x171   :  { %1179 = vst [vmem:[%s1495_s5 + $0x8] sm:$0xff] %v1177_v25  }

</bundles_post_ra>
